<compile_context>
chip_gen: v7x
topology: tpu7x:2x2x1
jax: 0.10.0
libtpu: 0.0.40
codegen_flags: <defaults>
</compile_context>

<pallas_src>
import math

import jax
import jax.numpy as jnp
from jax.experimental import pallas as pl
from jax.experimental.pallas import tpu as pltpu

_LANES = 128
_SUBLANES = 8
_TARGET_BLOCK_ROWS = 1024  # 1024 x 128 f32 = 512 KiB per input block


def _make_sq_diff_kernel(block_rows, valid_rows, need_mask):
    """Kernel: per grid step, write an (8, 128) partial sum of (x - y)^2."""
    sub_tiles = block_rows // _SUBLANES

    def kernel(x_ref, y_ref, o_ref):
        # In-kernel cast (free, in vregs) — inputs stay in native dtype in HBM.
        d = x_ref[...].astype(jnp.float32) - y_ref[...].astype(jnp.float32)
        d2 = d * d
        if need_mask:
            # Ragged last block: rows >= valid_rows are out-of-bounds garbage;
            # zero them out so they don't contribute to the sum.
            row = (pl.program_id(0) * block_rows
                   + jax.lax.broadcasted_iota(
                       jnp.int32, (block_rows, _LANES), 0))
            d2 = jnp.where(row < valid_rows, d2, 0.0)
        # Reduce (block_rows, 128) -> (8, 128): splitting the sublane-major
        # axis and summing over it is pure per-vreg VPU adds (no XLU in the
        # steady state), and the (8, 128) store is a full, unmasked tile.
        o_ref[...] = jnp.sum(d2.reshape(sub_tiles, _SUBLANES, _LANES), axis=0)

    return kernel


def _sum_sq_diff(X, Y):
    """Sum of squared differences over all elements, computed in Pallas."""
    n = X.size
    xf = X.reshape(-1)  # keep native dtype; reshape of contiguous data is free
    yf = Y.reshape(-1)

    min_block = _SUBLANES * _LANES  # 1024 elements
    if n % _LANES != 0 or n < min_block:
        # Rare path (non-128-multiple or tiny inputs): zero-pad to an
        # (8, 128)-aligned size.  Zero padding contributes 0 to the squared
        # difference sum and we divide by the true n outside, so semantics
        # match torch.nn.MSELoss exactly.  Typical NCHW image tensors
        # (e.g. N x 3 x 224 x 224) never take this branch.
        pad = (-n) % min_block
        xf = jnp.pad(xf, (0, pad))
        yf = jnp.pad(yf, (0, pad))
        total = n + pad
    else:
        total = n

    rows = total // _LANES
    # Largest multiple-of-8 row count <= rows, capped at the VMEM-sized target.
    block_rows = min(_TARGET_BLOCK_ROWS, (rows // _SUBLANES) * _SUBLANES)
    grid = -(-rows // block_rows)  # ceil div
    need_mask = (grid * block_rows != rows)

    x2 = xf.reshape(rows, _LANES)
    y2 = yf.reshape(rows, _LANES)

    kernel = _make_sq_diff_kernel(block_rows, rows, need_mask)
    itemsize = int(jnp.dtype(x2.dtype).itemsize)

    partials = pl.pallas_call(
        kernel,
        out_shape=jax.ShapeDtypeStruct((grid * _SUBLANES, _LANES), jnp.float32),
        grid_spec=pltpu.PrefetchScalarGridSpec(
            num_scalar_prefetch=0,
            grid=(grid,),
            in_specs=[
                pl.BlockSpec((block_rows, _LANES), lambda i: (i, 0)),
                pl.BlockSpec((block_rows, _LANES), lambda i: (i, 0)),
            ],
            # One distinct (8, 128) partial per grid step -> grid axis can be
            # "parallel" (both TCs on v7x), lane-dense unmasked stores.
            out_specs=pl.BlockSpec((_SUBLANES, _LANES), lambda i: (i, 0)),
        ),
        compiler_params=pltpu.CompilerParams(
            dimension_semantics=("parallel",)),
        cost_estimate=pl.CostEstimate(
            flops=3 * total,
            transcendentals=0,
            bytes_accessed=2 * total * itemsize
            + grid * _SUBLANES * _LANES * 4),
    )(x2, y2)

    # Tiny final reduction over per-block partials (grid*8*128 floats).
    return jnp.sum(partials)


def psnr_score(X, Y):
    """PSNR in decibels, matching PSNR.psnr() in the PyTorch module."""
    assert X.shape == Y.shape
    n = X.size
    mse = _sum_sq_diff(X, Y) / jnp.float32(n)
    # 20 * log10(1) == 0, kept for fidelity with the reference.
    return jnp.float32(20.0 * math.log10(1.0)) - 10.0 * jnp.log10(
        mse / 3.0 / 224.0)


def psnr_forward(X, Y, as_loss=True):
    """Matches PSNR.forward(X, Y, as_loss)."""
    assert X.shape == Y.shape
    score = psnr_score(X, Y)
    if as_loss:
        norm_score = score / 255.0
        return 1.0 - norm_score
    # as_loss=False only drops grad tracking in torch; value is identical.
    return score


if __name__ == "__main__":
    key = jax.random.PRNGKey(0)
    kx, ky = jax.random.split(key)
    # NCHW inputs, values in [0, 1] like normalized 8-bit images.
    X = jax.random.uniform(kx, (2, 3, 16, 16), dtype=jnp.float32)
    Y = jax.random.uniform(ky, (2, 3, 16, 16), dtype=jnp.float32)

    loss = psnr_forward(X, Y, as_loss=True)
    score = psnr_forward(X, Y, as_loss=False)
    jax.block_until_ready((loss, score))

    # Reference check in plain JAX.
    mse_ref = jnp.mean((X - Y) ** 2)
    score_ref = -10.0 * jnp.log10(mse_ref / 3.0 / 224.0)
    loss_ref = 1.0 - score_ref / 255.0
    assert jnp.allclose(score, score_ref, rtol=1e-5, atol=1e-5)
    assert jnp.allclose(loss, loss_ref, rtol=1e-5, atol=1e-5)

    print("KERNEL_OK")
</pallas_src>

<mosaic_0001>
module attributes {stable_mosaic.version = 11 : i64} {
  func.func @kernel(%arg0: i32, %arg1: memref<8x128xf32, #tpu.memory_space<vmem>>, %arg2: memref<8x128xf32, #tpu.memory_space<vmem>>, %arg3: memref<8x128xf32, #tpu.memory_space<vmem>>) attributes {dimension_semantics = [#tpu.dimension_semantics<parallel>], iteration_bounds = array<i64: 2>, scalar_prefetch = 0 : i64, scratch_operands = 0 : i64, tpu.core_type = #tpu.core_type<tc>, window_params = [{transform_indices = @transform_0, window_bounds = array<i64: 8, 128>}, {transform_indices = @transform_1, window_bounds = array<i64: 8, 128>}, {transform_indices = @transform_2, window_bounds = array<i64: 8, 128>}]} {
    %c0 = arith.constant 0 : index
    %c0_0 = arith.constant 0 : index
    %0 = vector.load %arg1[%c0, %c0_0] : memref<8x128xf32, #tpu.memory_space<vmem>>, vector<8x128xf32>
    %c0_1 = arith.constant 0 : index
    %c0_2 = arith.constant 0 : index
    %1 = vector.load %arg2[%c0_1, %c0_2] : memref<8x128xf32, #tpu.memory_space<vmem>>, vector<8x128xf32>
    %2 = arith.subf %0, %1 : vector<8x128xf32>
    %3 = arith.mulf %2, %2 : vector<8x128xf32>
    %c8_i32 = arith.constant 8 : i32
    %4 = arith.muli %arg0, %c8_i32 : i32
    %5 = tpu.iota {dimensions = array<i32: 0>} : vector<8x128xi32>
    %6 = vector.broadcast %4 : i32 to vector<8x128xi32>
    %7 = arith.addi %6, %5 : vector<8x128xi32>
    %c12_i32 = arith.constant 12 : i32
    %8 = vector.broadcast %c12_i32 : i32 to vector<8x128xi32>
    %9 = arith.cmpi slt, %7, %8 : vector<8x128xi32>
    %cst = arith.constant 0.000000e+00 : f32
    %10 = vector.broadcast %cst : f32 to vector<8x128xf32>
    %11 = arith.select %9, %3, %10 : vector<8x128xi1>, vector<8x128xf32>
    %12 = vector.shape_cast %11 : vector<8x128xf32> to vector<1x8x128xf32>
    %cst_3 = arith.constant dense<0.000000e+00> : vector<8x128xf32>
    %13 = vector.multi_reduction <add>, %12, %cst_3 [0] : vector<1x8x128xf32> to vector<8x128xf32>
    %c0_4 = arith.constant 0 : index
    %c0_5 = arith.constant 0 : index
    %14 = vector.load %arg3[%c0_4, %c0_5] : memref<8x128xf32, #tpu.memory_space<vmem>>, vector<8x128xf32>
    tpu.vector_store %arg3[%c0_4, %c0_5], %13 {strides = array<i32>} : memref<8x128xf32, #tpu.memory_space<vmem>>, vector<8x128xf32>,
    return
  }
  func.func @transform_0(%arg0: i32) -> (i32, i32) {
    %c0_i32 = arith.constant 0 : i32
    %c0_i32_0 = arith.constant 0 : i32
    return %arg0, %c0_i32 : i32, i32
  }
  func.func @transform_1(%arg0: i32) -> (i32, i32) {
    %c0_i32 = arith.constant 0 : i32
    %c0_i32_0 = arith.constant 0 : i32
    return %arg0, %c0_i32 : i32, i32
  }
  func.func @transform_2(%arg0: i32) -> (i32, i32) {
    %c0_i32 = arith.constant 0 : i32
    %c0_i32_0 = arith.constant 0 : i32
    return %arg0, %c0_i32 : i32, i32
  }
}

</mosaic_0001>

<bundles_post_ra>
// kernel: tpu_custom_call.1
= control target key start
LH: loop header
LB: loop body
LE: loop exit
PB: predicated region body
PF: predicated region fallthrough
CT: control target
= control target key end

     0   :  { %7 = vsyncpa [#allocation3], 0  ;;  %s743_s0 = inlined_call_operand.hbm [shape: f32[12,128], index: 0, kind: input, shape index: {}]   ;;  %s744_s1 = inlined_call_operand.hbm [shape: f32[12,128], index: 1, kind: input, shape index: {}]   ;;  %s745_s2 = inlined_call_operand.hbm [shape: f32[16,128], index: 2, kind: output, shape index: {}]  }
   0x1   :  { %9 = vsyncpa [#allocation3 + $0x1], 0 }
   0x2   :  { %10 = vsyncpa [#allocation6], 0 }
   0x3   :  { %12 = vsyncpa [#allocation6 + $0x1], 0 }
   0x4   :  { %13 = vsyncpa [#allocation4], 0 }
   0x5   :  { %15 = vsyncpa [#allocation4 + $0x1], 0  ;;  %s533_s9 = smov 0   ;;  %s535_s10 = smov 0  }
   0x6   :  { %s537_s11 = smov 0   ;;  %s539_s12 = smov 0  }
   0x7 LB: > { %s554_s13 = sadd.s32 4294967295, %s513_s12   ;;  %s316_s14 = sadd.s32 4294967294, %s513_s12   ;;  %s513_s12 = sphi %s539_s12, %s764_s12   ;;  %s509_s11 = sphi %s537_s11, %s763_s11   ;;  %s505_s10 = sphi %s535_s10, %s762_s10   ;;  %s501_s9 = sphi %s533_s9, %s761_s9  }
   0x8   : > { %s558_s15 = sadd.s32 1, %s513_s12   ;;  %s28_s16 = sadd.s32 1, %s509_s11 }
   0x9   : > { %s25_s17 = ssub.s32 %s513_s12, %s558_s15  ;;  %p35_p0 = scmp.ne.s32.totalorder %s509_s11, %s505_s10 }
   0xa   : > { %p26_p1 = scmp.eq.s32.totalorder %s25_s17, 0  ;;  %p36_p2 = scmp.eq.s32.totalorder %s513_s12, 0 }
   0xb   : > { %p41_p3 = scmp.ne.s32.totalorder %s505_s10, %s501_s9  ;;  %p42_p4 = scmp.eq.s32.totalorder %s554_s13, 0 }
   0xc   : > { %s570_s18 = scalar_select %p26_p1, %s509_s11, %s28_s16  }
   0xd   : > { %p572_p5 = por %p36_p2, %p35_p0  ;;  %p576_p6 = por %p42_p4, %p41_p3 }
   0xe   : > { %p91_p7 = scmp.eq.s32.totalorder %s554_s13, 1  ;;  %p97_p8 = scmp.eq.s32.totalorder %s316_s14, 1 }
   0xf   : > { %s749_s20 = scalar_select %p576_p6, 1, 0 }
  0x10   : > { %p349_p10 = scmp.lt.s32.totalorder %s513_s12, 2  ;;  %p583_p11 = por %p91_p7, %p35_p0 }
  0x11   : > { %p587_p12 = por %p97_p8, %p41_p3  ;;  %s592_s23 = sand.u32 1, %s509_s11  }
  0x12   : > { %s750_s21 = scalar_select %p583_p11, 1, 0 }
  0x13   : > { %s751_s22 = scalar_select %p587_p12, 1, 0 }
  0x14   : > { %s320_s24 = sshll.u32 %s513_s12, 7  ;;  %s319_s25 = sshll.u32 %s592_s23, 3 }
  0x15   : > { %s601_s28 = scalar_lea.hbm %s743_s0, %s320_s24  ;;  %s121_s29 = scalar_lea.vmem [#allocation2], %s319_s25 }
  0x16   : > { %s128_s30 = sshll.u32 %s121_s29, 4  ;;  %p607_p13 = pnand %p349_p10, %p572_p5  ;;  %s611_s30 = int_to_ptr.vmem [resolvable:$true] %s128_s30 }
  0x17   : > { %s118_s4 = scalar_lea.sflag [#allocation3], %s592_s23  ;;  %s383_s5 = scalar_lea.hbm %s601_s28, 128 }
  0x18   : > { %p384_p2 = scmp.ne.s32.totalorder %s601_s28, %s383_s5  ;;  %p385_p3 = pneg %p607_p13 }
  0x19   : > { %s388_s8 = scalar_lea.hbm %s743_s0, 256  ;;  %p389_p5 = scmp.lt.u32.totalorder %s601_s28, %s743_s0 }
  0x1a   : > { %p386_p4 = pnand %p385_p3, %p384_p2  ;;  %p390_p8 = scmp.lt.u32.totalorder %s388_s8, %s383_s5 }
  0x1b   : > { %p392_p9 = scmp.lt.u32.totalorder %s383_s5, %s601_s28 }
  0x1c   : > { %p387_p7 = pneg %p386_p4  ;;  %p391_p10 = por %p390_p8, %p389_p5 }
  0x1e   : > { %p393_p0 = por %p392_p9, %p391_p10 }
  0x20   : > { %p394_p1 = pnand %p393_p0, %p387_p7 }
  0x22   : > { %397 = shalt.err (!%p394_p1)
}
  0x23   : > { %s398_s17 = scalar_lea.vmem %s611_s30, 128  ;;  %s515_s19 = smov [#allocation2]  }
  0x24   : > { %p399_p2 = scmp.ne.s32.totalorder %s611_s30, %s398_s17  ;;  %s403_s26 = sshll.u32 %s515_s19, 4  ;;  %s404_s26 = int_to_ptr.vmem [resolvable:$false] %s403_s26 }
  0x25   : > { %s405_s27 = scalar_lea.vmem %s404_s26, 256  ;;  %p406_p11 = scmp.lt.s32.totalorder %s611_s30, %s404_s26 }
  0x26   : > { %p401_p4 = pnand %p399_p2, %p385_p3  ;;  %p407_p5 = scmp.lt.s32.totalorder %s405_s27, %s398_s17 }
  0x28   : > { %p402_p12 = pneg %p401_p4  ;;  %p408_p8 = por %p407_p5, %p406_p11 }
  0x2a   : > { %p409_p9 = pnand %p408_p8, %p402_p12 }
  0x2c   : > { %412 = shalt.err (!%p409_p9)
}
  0x2d   : > { %341 = dma.hbm_to_vmem [thread:$0]  (!%p607_p13), %s601_s28, 128, %s611_s30, %s118_s4  }
  0x2e   : > { %p753_p0 = scmp.lt.s32.totalorder %s513_s12, 3  ;;  %p754_p1 = scmp.ge.s32.totalorder %s513_s12, 1 }
  0x2f   : > { %s654_s7 = scalar_lea.hbm %s744_s1, %s320_s24  ;;  %s139_s8 = scalar_lea.vmem [#allocation5], %s319_s25 }
  0x30   : > { %p645_p7 = pnand %p754_p1, %p753_p0  ;;  %s146_s14 = sshll.u32 %s139_s8, 4  ;;  %s147_s14 = int_to_ptr.vmem [resolvable:$true] %s146_s14 }
  0x31   : > { %s136_s28 = scalar_lea.sflag [#allocation6], %s592_s23  ;;  %s413_s30 = scalar_lea.hbm %s654_s7, 128 }
  0x32   : > { %s755_s29 = scalar_select %p645_p7, 1, 0 }
  0x33   : > { %p414_p11 = scmp.ne.s32.totalorder %s654_s7, %s413_s30  ;;  %s418_s24 = scalar_lea.hbm %s744_s1, 256 }
  0x34   : > { %p419_p2 = scmp.lt.u32.totalorder %s654_s7, %s744_s1  ;;  %p420_p4 = scmp.lt.u32.totalorder %s418_s24, %s413_s30 }
  0x35   : > { %p416_p12 = pnand %p414_p11, %p385_p3  ;;  %p422_p8 = scmp.lt.u32.totalorder %s413_s30, %s654_s7 }
  0x36   : > { %p421_p5 = por %p420_p4, %p419_p2 }
  0x37   : > { %p417_p10 = pneg %p416_p12 }
  0x38   : > { %p423_p9 = por %p422_p8, %p421_p5 }
  0x3a   : > { %p424_p0 = pnand %p423_p9, %p417_p10 }
  0x3c   : > { %427 = shalt.err (!%p424_p0)
}
  0x3d   : > { %s428_s23 = scalar_lea.vmem %s147_s14, 128  ;;  %s516_s25 = smov [#allocation5]  }
  0x3e   : > { %p429_p1 = scmp.ne.s32.totalorder %s147_s14, %s428_s23  ;;  %s433_s26 = sshll.u32 %s516_s25, 4  ;;  %s434_s26 = int_to_ptr.vmem [resolvable:$false] %s433_s26 }
  0x3f   : > { %s435_s27 = scalar_lea.vmem %s434_s26, 256  ;;  %p436_p6 = scmp.lt.s32.totalorder %s147_s14, %s434_s26 }
  0x40   : > { %p431_p11 = pnand %p429_p1, %p385_p3  ;;  %p437_p7 = scmp.lt.s32.totalorder %s435_s27, %s428_s23 }
  0x42   : > { %p432_p12 = pneg %p431_p11  ;;  %p438_p2 = por %p437_p7, %p436_p6 }
  0x44   : > { %p439_p4 = pnand %p438_p2, %p432_p12 }
  0x46   : > { %442 = shalt.err (!%p439_p4)
}
  0x47   : > { %344 = dma.hbm_to_vmem [thread:$0]  (!%p607_p13), %s654_s7, 128, %s147_s14, %s136_s28  }
  0x48   : > { %p756_p10 = scmp.ne.s32.totalorder %s755_s29, 0 }
  0x49   : > { %s681_s5 = sand.u32 (!%p756_p10), 1, %s505_s10   ;;  %p757_p3 = scmp.ne.s32.totalorder (!%p756_p10), %s749_s20, 0 }
  0x4a   : > { %155 = sbr.rel (%p756_p10) target bundleno = 110 (0x6e), region = 28  ;;  %s324_s6 = sshll.u32 (!%p756_p10), %s681_s5, 3 }
  0x4b   : > { %s158_s8 = scalar_lea.sflag (!%p756_p10), [#allocation3], %s681_s5  ;;  %s161_s30 = scalar_lea.vmem (!%p756_p10), [#allocation2], %s324_s6 }
  0x51   : > { %488 = dma.done.wait (%p757_p3), %s158_s8, 128  }
  0x52   : > { %490 = vsyncadd (%p757_p3), %s158_s8, 4294967168  ;;  %s167_s3 = scalar_lea.sflag [#allocation6], %s681_s5  ;;  %s170_s7 = scalar_lea.vmem [#allocation5], %s324_s6 }
  0x53   : > { %492 = dma.done.wait (%p757_p3), %s167_s3, 128  }
  0x54   : > { %494 = vsyncadd (%p757_p3), %s167_s3, 4294967168  ;;  %s327_s29 = sshll.u32 %s554_s13, 3  ;;  %v201_v0 = vlaneseq  ;;  %v196_v4 = vld [vmem:[%s161_s30] sm:$0xff]  ;;  %v197_v5 = vld [vmem:[%s170_s7] sm:$0xff]  ;;  %s195_s14 = scalar_lea.vmem [#allocation7], %s324_s6 }
  0x55   : > { %v203_v2 = vstv %s327_s29  ;;  %v198_v6 = vsub.f32 %v196_v4, %v197_v5  ;;  %s223_s28 = sshll.u32 %s195_s14, 4  ;;  %s329_s4 = sshll.u32 %s554_s13, 7  ;;  %s696_s28 = int_to_ptr.vmem [resolvable:$true] %s223_s28 }
  0x56   : > { %v202_v1 = vshrl.u32 %v201_v0, 7  ;;  %s701_s24 = scalar_lea.hbm %s745_s2, %s329_s4  ;;  %s210_s17 = scalar_lea.sflag [#allocation4], %s681_s5 }
  0x57   : > { %v199_v7 = vmul.f32 %v198_v6, %v198_v6  ;;  %s443_s19 = scalar_lea.vmem %s696_s28, 128  ;;  %p758_p13 = scmp.ne.s32.totalorder %s750_s21, 0 }
  0x58   : > { %v204_v3 = vadd.s32 %v203_v2, %v202_v1  ;;  %p444_p6 = scmp.ne.s32.totalorder %s696_s28, %s443_s19  ;;  %s517_s13 = smov [#allocation7]  }
  0x59   : > { %s447_s23 = sshll.u32 %s517_s13, 4  ;;  %s448_s23 = int_to_ptr.vmem [resolvable:$false] %s447_s23 }
  0x5a   : > { %vm205_vm0 = vcmp.lt.s32.totalorder %v204_v3, 12  ;;  %p445_p7 = pnand %p444_p6, %p758_p13  ;;  %s449_s25 = scalar_lea.vmem %s448_s23, 256 }
  0x5b   : > { %v206_v8 = vsel %vm205_vm0, %v199_v7, 0.0  ;;  %p450_p8 = scmp.lt.s32.totalorder %s696_s28, %s448_s23  ;;  %p451_p9 = scmp.lt.s32.totalorder %s449_s25, %s443_s19 }
  0x5c   : > { %208 = vst [vmem:[%s195_s14] sm:$0xff] %v206_v8  ;;  %p446_p5 = pneg %p445_p7 }
  0x5d   : > { %p452_p0 = por %p451_p9, %p450_p8 }
  0x5f   : > { %p453_p1 = pnand %p452_p0, %p446_p5 }
  0x61   : > { %456 = shalt.err (!%p453_p1)
}
  0x62   : > { %s457_s26 = scalar_lea.hbm %s701_s24, 128  ;;  %s461_s6 = scalar_lea.hbm %s745_s2, 256 }
  0x63   : > { %p458_p11 = scmp.ne.s32.totalorder %s701_s24, %s457_s26  ;;  %p462_p4 = scmp.lt.u32.totalorder %s701_s24, %s745_s2 }
  0x64   : > { %p463_p10 = scmp.lt.u32.totalorder %s461_s6, %s457_s26  ;;  %p465_p6 = scmp.lt.u32.totalorder %s457_s26, %s701_s24 }
  0x65   : > { %p459_p12 = pnand %p458_p11, %p758_p13 }
  0x66   : > { %p464_p3 = por %p463_p10, %p462_p4 }
  0x67   : > { %p460_p2 = pneg %p459_p12 }
  0x68   : > { %p466_p7 = por %p465_p6, %p464_p3 }
  0x6a   : > { %p467_p5 = pnand %p466_p7, %p460_p2 }
  0x6c   : > { %470 = shalt.err (!%p467_p5)
}
  0x6d   : > { %336 = dma.vmem_to_hbm [thread:$0]  (%p758_p13), %s696_s28, 128, %s701_s24, %s210_s17  }
  0x6e PF: > { %s235_s3 = sand.u32 1, %s501_s9   ;;  %p759_p8 = scmp.ne.s32.totalorder %s751_s22, 0 }
  0x6f   : > { %p760_p9 = scmp.ge.s32.totalorder %s513_s12, 2  ;;  %s236_s7 = scalar_lea.sflag [#allocation4], %s235_s3 }
  0x71   : > { %p346_p0 = pnand %p760_p9, %p759_p8 }
  0x73   : > { %496 = dma.done.wait (!%p346_p0), %s236_s7, 128  }
  0x74   : > { %498 = vsyncadd (!%p346_p0), %s236_s7, 4294967168  ;;  %p18_p1 = scmp.ge.s32.totalorder %s558_s15, 4   ;;  %s761_s9 = smov %s505_s10 }
  0x75   : > { %s762_s10 = smov %s509_s11  ;;  %s763_s11 = smov %s570_s18 }
  0x76   : > { %s764_s12 = smov %s558_s15  ;;  %20 = sbr.rel (!%p18_p1) target bundleno = 7 (0x7), region = 86 }
  0x7d   :  { %241 = vsyncpa [#allocation3], 1 }
  0x7e   :  { %243 = vsyncpa [#allocation3 + $0x1], 1 }
  0x7f   :  { %244 = vsyncpa [#allocation6], 1 }
  0x80   :  { %246 = vsyncpa [#allocation6 + $0x1], 1 }
  0x81   :  { %247 = vsyncpa [#allocation4], 1 }
  0x82   :  { %249 = vsyncpa [#allocation4 + $0x1], 1 }

</bundles_post_ra>
